<compile_context>
chip_gen: v5e
topology: v5e:2x2
jax: 0.10.0
libtpu: 0.0.40
codegen_flags: <defaults>
</compile_context>

<pallas_src>
import functools

import jax
import jax.numpy as jnp
from jax import lax
from jax.experimental import pallas as pl
from jax.experimental.pallas import tpu as pltpu

EPSILON = 1e-12

# CapsuleLayer defaults, with channel counts scaled down for a small demo.
NUM_CAPSULES = 2
IN_CHANNELS = 4
OUT_CHANNELS = 8
KERNEL_SIZE = 9
STRIDE = 2

_VMEM_CAP_BYTES = 44 * 2**20   # conservative across v5e/v6e (128 MiB) & v7x (64 MiB/TC)
_VMEM_HEADROOM = 4 * 2**20     # compiler internal scratch


def _round_up(x, m):
    return ((x + m - 1) // m) * m


def _choose_tile(total_padded, target, prefer_even_count=False):
    """Pick a tile (multiple of 128) that divides `total_padded` exactly.

    prefer_even_count biases toward an even number of tiles so v7x's two
    TensorCores both get work on the "parallel" grid axis.
    """
    nb = total_padded // 128
    max_d = max(1, min(nb, target // 128))
    divs = [d for d in range(1, max_d + 1) if nb % d == 0]
    if prefer_even_count:
        even = [d for d in divs if (nb // d) % 2 == 0]
        if even:
            return max(even) * 128
    return max(divs) * 128


def _vmem_bytes(N, Kp, tk, tm, p_bufs):
    """Exact VMEM footprint for the chosen tiling (buffer_count x block bytes)."""
    w = 2 * N * Kp * 2            # resident bf16 weights (count 2 buffers, safe)
    p = p_bufs * tk * tm * 2      # bf16 patch tiles
    b = 2 * N * 128 * 4           # (N, 1) bias block pads lanes to 128
    o = 2 * N * tm * 4            # f32 output tiles
    acc = N * tm * 4              # f32 accumulator scratch
    return w + p + b + o + acc


# ----------------------------- Pallas kernel -------------------------------

def _caps_conv_squash_kernel(num_caps, cout, tk, w_ref, p_ref, b_ref, o_ref,
                             acc_ref):
    """One (M-tile, K-tile) grid step of  W[N,Kp] @ P^T[tk,tm]  + fused squash.

    w_ref:   [N, Kp]  bf16  VMEM-resident weights (rows cap-major, cout-minor)
    p_ref:   [tk, tm] bf16  patches^T tile (columns ordered (b, ho, wo))
    b_ref:   [N, 1]   f32   conv bias
    o_ref:   [N, tm]  out   squashed capsule outputs (lane-dense)
    acc_ref: [N, tm]  f32   accumulator, persists across the K axis
    """
    kk = pl.program_id(1)

    @pl.when(kk == 0)
    def _init():
        acc_ref[...] = jnp.broadcast_to(
            b_ref[...].astype(jnp.float32), acc_ref.shape)

    k0 = pl.multiple_of(kk * tk, 128)
    acc_ref[...] += jnp.dot(w_ref[:, pl.ds(k0, tk)], p_ref[...],
                            preferred_element_type=jnp.float32)

    @pl.when(kk == pl.num_programs(1) - 1)
    def _finalize():
        u = acc_ref[...]                                  # [N, tm] f32
        # squash over the capsule axis (rows are cap-major, cout-minor).
        sn = jnp.zeros((cout, u.shape[1]), jnp.float32)
        for c in range(num_caps):                         # static unroll
            uc = u[c * cout:(c + 1) * cout, :]
            sn = sn + uc * uc
        inv = pl.reciprocal(1.0 + sn + EPSILON, approx=True)     # EUP slot
        scale = (sn * inv) * lax.rsqrt(sn + EPSILON)             # [cout, tm]
        for c in range(num_caps):                         # per-capsule stores
            uc = u[c * cout:(c + 1) * cout, :]
            o_ref[c * cout:(c + 1) * cout, :] = (uc * scale).astype(o_ref.dtype)


# ------------------------------- glue (JAX) --------------------------------

def _extract_patches_t(x_bf, k, s, Kp, Mp):
    """im2col^T in bf16, padded in the same pass: NCHW -> [Kp, Mp].

    K rows ordered (ci, kh, kw); M columns ordered (b, ho, wo).
    """
    B, Cin, H, W = x_bf.shape
    Ho = (H - k) // s + 1
    Wo = (W - k) // s + 1
    ih = (jnp.arange(Ho) * s)[:, None] + jnp.arange(k)[None, :]   # [Ho, k]
    iw = (jnp.arange(Wo) * s)[:, None] + jnp.arange(k)[None, :]   # [Wo, k]
    p = x_bf[:, :, ih, :]                 # [B, Cin, Ho, kh, W]
    p = p[:, :, :, :, iw]                 # [B, Cin, Ho, kh, Wo, kw]
    p = jnp.transpose(p, (1, 3, 5, 0, 2, 4))    # [Cin, kh, kw, B, Ho, Wo]
    p = p.reshape(Cin * k * k, B * Ho * Wo)
    return jnp.pad(p, ((0, Kp - Cin * k * k), (0, Mp - B * Ho * Wo)))


def _patch_spec(tk, tm, bufs):
    idx = lambda i, kk: (kk, i)
    if bufs <= 2:
        return pl.BlockSpec((tk, tm), idx)
    try:
        return pl.BlockSpec((tk, tm), idx, pipeline_mode=pl.Buffered(bufs))
    except Exception:   # pipeline_mode unavailable in this JAX version
        return pl.BlockSpec((tk, tm), idx)


def capsule_layer_forward(x, weights, biases, *, tm_target=2048, tk_target=2048):
    """x: [B, Cin, H, W] f32; weights: [num_caps, Cout, Cin, k, k]; biases: [num_caps, Cout].

    Returns [B, num_nodes, num_caps] with num_nodes = Cout*Ho*Wo, matching
    torch.cat([capsule(x).view(B, -1, 1) for ...], -1) followed by squash(dim=-1).
    """
    B, Cin, H, W = x.shape
    num_caps, cout, _, k, _ = weights.shape
    Ho = (H - k) // STRIDE + 1
    Wo = (W - k) // STRIDE + 1
    K = Cin * k * k
    M = B * Ho * Wo
    N = num_caps * cout

    Kp = _round_up(K, 128)
    Mp = _round_up(M, 128)

    # Tile selection: exact divisors of the padded extents (no dead columns),
    # shrunk until the exact VMEM footprint fits the cap.
    while True:
        tk = _choose_tile(Kp, tk_target)
        tm = _choose_tile(Mp, tm_target, prefer_even_count=True)
        p_bufs = 3 if Kp // tk >= 3 else 2
        est = _vmem_bytes(N, Kp, tk, tm, p_bufs)
        if est + _VMEM_HEADROOM <= _VMEM_CAP_BYTES or (tk == 128 and tm == 128):
            break
        if tk >= tm:
            tk_target = max(128, tk // 2)
        else:
            tm_target = max(128, tm // 2)
    vmem_limit = int(min(_VMEM_CAP_BYTES,
                         max(est + _VMEM_HEADROOM, 16 * 2**20)))

    # bf16 operands for the MXU; cast + pad fused into the single im2col pass.
    # Zero padding contributes nothing to the dot.
    x_bf = x.astype(jnp.bfloat16)
    p_bf = _extract_patches_t(x_bf, k, STRIDE, Kp, Mp)               # [Kp, Mp]
    w_bf = jnp.pad(weights.reshape(N, K).astype(jnp.bfloat16),
                   ((0, 0), (0, Kp - K)))                            # [N, Kp]
    b2d = biases.reshape(N, 1).astype(jnp.float32)

    kernel = functools.partial(_caps_conv_squash_kernel, num_caps, cout, tk)

    out2d = pl.pallas_call(
        kernel,
        out_shape=jax.ShapeDtypeStruct((N, Mp), x.dtype),
        grid=(Mp // tm, Kp // tk),
        in_specs=[
            pl.BlockSpec((N, Kp), lambda i, kk: (0, 0)),    # W: VMEM-resident
            _patch_spec(tk, tm, p_bufs),                    # patches^T stream
            pl.BlockSpec((N, 1), lambda i, kk: (0, 0)),     # bias [N, 1]
        ],
        out_specs=pl.BlockSpec((N, tm), lambda i, kk: (0, i)),
        scratch_shapes=[pltpu.VMEM((N, tm), jnp.float32)],
        compiler_params=pltpu.CompilerParams(
            dimension_semantics=("parallel", "arbitrary"),
            vmem_limit_bytes=vmem_limit),
    )(w_bf, p_bf, b2d)

    out2d = out2d[:, :M]                              # [num_caps*Cout, B*Ho*Wo]
    out = out2d.reshape(num_caps, cout, B, Ho, Wo)
    out = jnp.transpose(out, (2, 1, 3, 4, 0))         # [B, Cout, Ho, Wo, caps]
    return out.reshape(B, cout * Ho * Wo, num_caps)   # node order = (Cout, Ho, Wo)


# --------------------------- pure-JAX reference -----------------------------

def reference_forward(x, weights, biases):
    outs = []
    for c in range(weights.shape[0]):
        y = lax.conv_general_dilated(
            x, weights[c], window_strides=(STRIDE, STRIDE), padding="VALID",
            dimension_numbers=("NCHW", "OIHW", "NCHW"))
        y = y + biases[c][None, :, None, None]
        outs.append(y.reshape(x.shape[0], -1, 1))
    u = jnp.concatenate(outs, axis=-1)                 # [B, num_nodes, num_caps]
    sn = jnp.sum(u * u, axis=-1, keepdims=True)
    scale = sn / (1.0 + sn + EPSILON)
    return scale * u / jnp.sqrt(sn + EPSILON)


if __name__ == "__main__":
    key = jax.random.PRNGKey(0)
    kx, kw, kb = jax.random.split(key, 3)

    B, H, W = 2, 16, 16
    x = jax.random.normal(kx, (B, IN_CHANNELS, H, W), dtype=jnp.float32)

    # Deterministic "torch.randn"-style parameter init (scaled for stability).
    weights = 0.1 * jax.random.normal(
        kw, (NUM_CAPSULES, OUT_CHANNELS, IN_CHANNELS, KERNEL_SIZE, KERNEL_SIZE),
        dtype=jnp.float32)
    biases = 0.1 * jax.random.normal(
        kb, (NUM_CAPSULES, OUT_CHANNELS), dtype=jnp.float32)

    out = jax.block_until_ready(capsule_layer_forward(x, weights, biases))
    ref = jax.block_until_ready(reference_forward(x, weights, biases))

    assert out.shape == ref.shape, (out.shape, ref.shape)
    max_err = float(jnp.max(jnp.abs(out - ref)))
    # Tolerance loosened vs the f32 reference: matmul operands are bf16 and the
    # squash denominator uses the approximate EUP reciprocal.
    assert jnp.allclose(out, ref, atol=3e-2, rtol=3e-2), max_err

    print("KERNEL_OK")
</pallas_src>

<mosaic_0001>
module attributes {stable_mosaic.version = 11 : i64} {
  func.func @_caps_conv_squash_kernel(%arg0: i32, %arg1: i32, %arg2: memref<16x384xbf16, #tpu.memory_space<vmem>>, %arg3: memref<384x128xbf16, #tpu.memory_space<vmem>>, %arg4: memref<16x1xf32, #tpu.memory_space<vmem>>, %arg5: memref<16x128xf32, #tpu.memory_space<vmem>>, %arg6: memref<16x128xf32, #tpu.memory_space<vmem>>) attributes {dimension_semantics = [#tpu.dimension_semantics<parallel>, #tpu.dimension_semantics<arbitrary>], iteration_bounds = array<i64: 1, 1>, scalar_prefetch = 0 : i64, scratch_operands = 1 : i64, tpu.core_type = #tpu.core_type<tc>, window_params = [{pipeline_mode = #tpu.pipeline_mode<synchronous>, transform_indices = @transform_0, window_bounds = array<i64: 16, 384>}, {transform_indices = @transform_1, window_bounds = array<i64: 384, 128>}, {pipeline_mode = #tpu.pipeline_mode<synchronous>, transform_indices = @transform_2, window_bounds = array<i64: 16, 1>}, {transform_indices = @transform_3, window_bounds = array<i64: 16, 128>}]} {
    %c0_i32 = arith.constant 0 : i32
    %0 = arith.cmpi eq, %arg1, %c0_i32 : i32
    %1 = arith.extui %0 : i1 to i32
    %c0_i32_0 = arith.constant 0 : i32
    %2 = arith.cmpi ne, %1, %c0_i32_0 : i32
    scf.if %2 {
      %c0_9 = arith.constant 0 : index
      %c0_10 = arith.constant 0 : index
      %15 = vector.load %arg4[%c0_9, %c0_10] : memref<16x1xf32, #tpu.memory_space<vmem>>, vector<16x1xf32>
      %16 = vector.shape_cast %15 : vector<16x1xf32> to vector<16x1xf32>
      %17 = vector.broadcast %16 : vector<16x1xf32> to vector<16x128xf32>
      %c0_11 = arith.constant 0 : index
      %c0_12 = arith.constant 0 : index
      %18 = vector.load %arg6[%c0_11, %c0_12] : memref<16x128xf32, #tpu.memory_space<vmem>>, vector<16x128xf32>
      tpu.vector_store %arg6[%c0_11, %c0_12], %17 {strides = array<i32>} : memref<16x128xf32, #tpu.memory_space<vmem>>, vector<16x128xf32>,
    } else {
    }
    %c384_i32 = arith.constant 384 : i32
    %3 = arith.muli %arg1, %c384_i32 : i32
    %4 = tpu.assume_multiple %3, 128 : i32
    %c0 = arith.constant 0 : index
    %c0_1 = arith.constant 0 : index
    %5 = vector.load %arg6[%c0, %c0_1] : memref<16x128xf32, #tpu.memory_space<vmem>>, vector<16x128xf32>
    %c0_2 = arith.constant 0 : index
    %6 = arith.index_cast %4 : i32 to index
    %7 = vector.load %arg2[%c0_2, %6] : memref<16x384xbf16, #tpu.memory_space<vmem>>, vector<16x384xbf16>
    %c0_3 = arith.constant 0 : index
    %c0_4 = arith.constant 0 : index
    %8 = vector.load %arg3[%c0_3, %c0_4] : memref<384x128xbf16, #tpu.memory_space<vmem>>, vector<384x128xbf16>
    %cst = arith.constant dense<0.000000e+00> : vector<16x128xf32>
    %9 = tpu.matmul %7, %8, %cst {dimension_numbers = #tpu.dot_dimension_numbers<[1], [0], [0], [1], [0, 0, 1, 1], [], []>} : vector<16x384xbf16>, vector<384x128xbf16>, vector<16x128xf32> -> vector<16x128xf32>
    %10 = arith.addf %5, %9 : vector<16x128xf32>
    %c0_5 = arith.constant 0 : index
    %c0_6 = arith.constant 0 : index
    %11 = vector.load %arg6[%c0_5, %c0_6] : memref<16x128xf32, #tpu.memory_space<vmem>>, vector<16x128xf32>
    tpu.vector_store %arg6[%c0_5, %c0_6], %10 {strides = array<i32>} : memref<16x128xf32, #tpu.memory_space<vmem>>, vector<16x128xf32>,
    %c0_i32_7 = arith.constant 0 : i32
    %12 = arith.cmpi eq, %arg1, %c0_i32_7 : i32
    %13 = arith.extui %12 : i1 to i32
    %c0_i32_8 = arith.constant 0 : i32
    %14 = arith.cmpi ne, %13, %c0_i32_8 : i32
    scf.if %14 {
      %c0_9 = arith.constant 0 : index
      %c0_10 = arith.constant 0 : index
      %15 = vector.load %arg6[%c0_9, %c0_10] : memref<16x128xf32, #tpu.memory_space<vmem>>, vector<16x128xf32>
      %cst_11 = arith.constant 0.000000e+00 : f32
      %16 = vector.broadcast %cst_11 : f32 to vector<8x128xf32>
      %17 = vector.extract_strided_slice %15 {offsets = [0, 0], sizes = [8, 128], strides = [1, 1]} : vector<16x128xf32> to vector<8x128xf32>
      %18 = arith.mulf %17, %17 : vector<8x128xf32>
      %19 = arith.addf %16, %18 : vector<8x128xf32>
      %20 = vector.extract_strided_slice %15 {offsets = [8, 0], sizes = [8, 128], strides = [1, 1]} : vector<16x128xf32> to vector<8x128xf32>
      %21 = arith.mulf %20, %20 : vector<8x128xf32>
      %22 = arith.addf %19, %21 : vector<8x128xf32>
      %cst_12 = arith.constant 1.000000e+00 : f32
      %23 = vector.broadcast %cst_12 : f32 to vector<8x128xf32>
      %24 = arith.addf %23, %22 : vector<8x128xf32>
      %cst_13 = arith.constant 9.99999996E-13 : f32
      %25 = vector.broadcast %cst_13 : f32 to vector<8x128xf32>
      %26 = arith.addf %24, %25 : vector<8x128xf32>
      %27 = tpu.reciprocal %26 {approx = true} : vector<8x128xf32> -> vector<8x128xf32>
      %28 = arith.mulf %22, %27 : vector<8x128xf32>
      %cst_14 = arith.constant 9.99999996E-13 : f32
      %29 = vector.broadcast %cst_14 : f32 to vector<8x128xf32>
      %30 = arith.addf %22, %29 : vector<8x128xf32>
      %31 = math.rsqrt %30 : vector<8x128xf32>
      %32 = arith.mulf %28, %31 : vector<8x128xf32>
      %33 = vector.extract_strided_slice %15 {offsets = [0, 0], sizes = [8, 128], strides = [1, 1]} : vector<16x128xf32> to vector<8x128xf32>
      %34 = arith.mulf %33, %32 : vector<8x128xf32>
      %c0_15 = arith.constant 0 : index
      %c0_16 = arith.constant 0 : index
      %35 = vector.load %arg5[%c0_15, %c0_16] : memref<16x128xf32, #tpu.memory_space<vmem>>, vector<8x128xf32>
      tpu.vector_store %arg5[%c0_15, %c0_16], %34 {strides = array<i32>} : memref<16x128xf32, #tpu.memory_space<vmem>>, vector<8x128xf32>,
      %36 = vector.extract_strided_slice %15 {offsets = [8, 0], sizes = [8, 128], strides = [1, 1]} : vector<16x128xf32> to vector<8x128xf32>
      %37 = arith.mulf %36, %32 : vector<8x128xf32>
      %c8 = arith.constant 8 : index
      %c0_17 = arith.constant 0 : index
      %38 = vector.load %arg5[%c8, %c0_17] : memref<16x128xf32, #tpu.memory_space<vmem>>, vector<8x128xf32>
      tpu.vector_store %arg5[%c8, %c0_17], %37 {strides = array<i32>} : memref<16x128xf32, #tpu.memory_space<vmem>>, vector<8x128xf32>,
    } else {
    }
    return
  }
  func.func @transform_0(%arg0: i32, %arg1: i32) -> (i32, i32) {
    %c0_i32 = arith.constant 0 : i32
    %c0_i32_0 = arith.constant 0 : i32
    %c0_i32_1 = arith.constant 0 : i32
    return %c0_i32, %c0_i32_0 : i32, i32
  }
  func.func @transform_1(%arg0: i32, %arg1: i32) -> (i32, i32) {
    %c0_i32 = arith.constant 0 : i32
    return %arg1, %arg0 : i32, i32
  }
  func.func @transform_2(%arg0: i32, %arg1: i32) -> (i32, i32) {
    %c0_i32 = arith.constant 0 : i32
    %c0_i32_0 = arith.constant 0 : i32
    %c0_i32_1 = arith.constant 0 : i32
    return %c0_i32, %c0_i32_0 : i32, i32
  }
  func.func @transform_3(%arg0: i32, %arg1: i32) -> (i32, i32) {
    %c0_i32 = arith.constant 0 : i32
    %c0_i32_0 = arith.constant 0 : i32
    return %c0_i32, %arg0 : i32, i32
  }
}

</mosaic_0001>

<bundles_post_ra>
// kernel: tpu_custom_call.1
= control target key start
LH: loop header
LB: loop body
LE: loop exit
PB: predicated region body
PF: predicated region fallthrough
CT: control target
= control target key end

     0   :  { %8 = vsyncpa [#allocation4], 0  ;;  %s654_s0 = inlined_call_operand.hbm [shape: bf16[16,384], index: 0, kind: input, shape index: {}]   ;;  %s655_s1 = inlined_call_operand.hbm [shape: bf16[384,128], index: 1, kind: input, shape index: {}]   ;;  %s656_s2 = inlined_call_operand.vmem [shape: f32[16,1], index: 2, kind: input, shape index: {}]   ;;  %s657_s3 = inlined_call_operand.hbm [shape: f32[16,128], index: 3, kind: output, shape index: {}]  }
   0x1   :  { %9 = vsyncpa [#allocation7], 0 }
   0x2   :  { %10 = vsyncpa [#allocation5], 0  ;;  %s15_s14 = sshll.u32 %s654_s0, 4  ;;  %s609_s15 = smov [#allocation3]   ;;  %s16_s14 = int_to_ptr.hbm [resolvable:$true] %s15_s14 }
   0x3   :  { %s17_s16 = sshll.u32 %s609_s15, 4  ;;  %s28_s19 = sshll.u32 %s655_s1, 4  ;;  %s18_s16 = int_to_ptr.vmem [resolvable:$true] %s17_s16  ;;  %s29_s19 = int_to_ptr.hbm [resolvable:$true] %s28_s19 }
   0x4   :  { %s610_s20 = smov 192   ;;  %s611_s21 = smov 12  }
   0x5   :  { %23 = dma.hbm_to_vmem [thread:$0]  %s16_s14, 384, %s18_s16, [#allocation4], %s610_s20, %s610_s20, %s611_s21  }
   0x6   :  { %s612_s22 = smov [#allocation6]   ;;  %s613_s24 = smov 64  }
   0x7   :  { %s30_s23 = sshll.u32 %s612_s22, 4  ;;  %s614_s25 = smov 4   ;;  %s31_s23 = int_to_ptr.vmem [resolvable:$true] %s30_s23 }
   0x8   :  { %36 = dma.hbm_to_vmem [thread:$0]  %s29_s19, 3072, %s31_s23, [#allocation7], %s613_s24, %s613_s24, %s614_s25  }
   0x9   :  { %603 = dma.done.wait [#allocation4], 384  }
   0xa   :  { %604 = vsyncadd [#allocation4], 4294966912 }
   0xb   :  { %605 = dma.done.wait [#allocation7], 3072  }
   0xc   :  { %606 = vsyncadd [#allocation7], 4294964224  ;;  %v499_v0 = vld [vmem:[#allocation6 + $0x38] sm:$0xff]  ;;  %v498_v3 = vld [vmem:[#allocation6 + $0x30] sm:$0xff]  ;;  %v615_v6 = vmov 0   ;;  %s365_s4 = sshll.u32 %s657_s3, 4  ;;  %s366_s4 = int_to_ptr.hbm [resolvable:$true] %s365_s4 }
   0xd   :  { %v507_v1 = vld [vmem:[#allocation6 + $0x78] sm:$0xff]  ;;  %284 = vmatpush.bf16.msra.mxu0 %v499_v0  ;;  %v506_v4 = vld [vmem:[#allocation6 + $0x70] sm:$0xff]  ;;  %526 = vset.pattern.permute.xlu0 %v615_v6  ;;  %v497_v7 = vld [vmem:[#allocation6 + $0x28] sm:$0xff]  ;;  %s617_s5 = smov 128   ;;  %s618_s6 = smov 8  }
   0xe   :  { %v515_v2 = vld [vmem:[#allocation6 + $0xb8] sm:$0xff]  ;;  %298 = vmatpush.bf16.msra.mxu1 %v507_v1  ;;  %v514_v5 = vld [vmem:[#allocation6 + $0xb0] sm:$0xff]  ;;  %v505_v8 = vld [vmem:[#allocation6 + $0x68] sm:$0xff] }
   0xf   :  { %312 = vmatpush.bf16.msra.mxu2 %v515_v2  ;;  %v513_v9 = vld [vmem:[#allocation6 + $0xa8] sm:$0xff]  ;;  %v496_v10 = vld [vmem:[#allocation6 + $0x20] sm:$0xff]  ;;  %v495_v14 = vld [vmem:[#allocation6 + $0x18] sm:$0xff] }
  0x10   :  { %v504_v11 = vld [vmem:[#allocation6 + $0x60] sm:$0xff]  ;;  %v51_v12 = vld [vmem:[%s656_s2] sm:$0xff]  ;;  %v503_v15 = vld [vmem:[#allocation6 + $0x58] sm:$0xff] }
  0x11   :  { %285 = vmatpush.bf16.msra.mxu0 %v498_v3  ;;  %v512_v13 = vld [vmem:[#allocation6 + $0xa0] sm:$0xff]  ;;  %55 = vperm.xlu0 %526, %v51_v12   ;;  %v511_v16 = vld [vmem:[#allocation6 + $0x98] sm:$0xff]  ;;  %v52_v17 = vld [vmem:[%s656_s2 + $0x8] sm:$0xff]  ;;  %s616_s2 = smov [#allocation8]  }
  0x12   :  { %299 = vmatpush.bf16.msra.mxu1 %v506_v4  ;;  %v494_v18 = vld [vmem:[#allocation6 + $0x10] sm:$0xff]  ;;  %v493_v21 = vld [vmem:[#allocation6 + $0x8] sm:$0xff]  ;;  %v492_v24 = vld [vmem:[#allocation6] sm:$0xff]  ;;  %s363_s28 = sshll.u32 %s616_s2, 4  ;;  %s364_s28 = int_to_ptr.vmem [resolvable:$true] %s363_s28 }
  0x13   :  { %313 = vmatpush.bf16.msra.mxu2 %v514_v5  ;;  %v502_v19 = vld [vmem:[#allocation6 + $0x50] sm:$0xff]  ;;  %v501_v22 = vld [vmem:[#allocation6 + $0x48] sm:$0xff]  ;;  %v500_v25 = vld [vmem:[#allocation6 + $0x40] sm:$0xff] }
  0x14   :  { %v510_v20 = vld [vmem:[#allocation6 + $0x90] sm:$0xff]  ;;  %v509_v23 = vld [vmem:[#allocation6 + $0x88] sm:$0xff]  ;;  %v385_v29 = vld [vmem:[#allocation3 + $0xc] sm:$0xf0] }
  0x15   :  { %286 = vmatpush.bf16.msra.mxu0 %v497_v7  ;;  %v383_v26 = vld [vmem:[#allocation3] sm:$0xf]  ;;  %v490_v27 = vld [vmem:[#allocation3 + $0x8] sm:$0xf0]  ;;  %v489_v28 = vld [vmem:[#allocation3 + $0x4] sm:$0xf] }
  0x16   :  { %300 = vmatpush.bf16.msra.mxu1 %v505_v8  ;;  %v508_v30 = vld [vmem:[#allocation6 + $0x80] sm:$0xff]  ;;  %v391_v31 = vld [vmem:[#allocation3 + $0x8] sm:$0xf]  ;;  %v491_v32 = vld [vmem:[#allocation3 + $0x10] sm:$0xf0]  ;;  %v384_v33 = vor.u32 %v490_v27, %v383_v26  ;;  %v388_v34 = vor.u32 %v489_v28, %v385_v29 }
  0x17   :  { %314 = vmatpush.bf16.msra.mxu2 %v513_v9  ;;  %v392_v35 = vor.u32 %v491_v32, %v391_v31 }
  0x19   :  { %287 = vmatpush.bf16.msra.mxu0 %v496_v10  ;;  %60 = vperm.xlu0 %526, %v52_v17  }
  0x1a   :  { %301 = vmatpush.bf16.msra.mxu1 %v504_v11 }
  0x1b   :  { %315 = vmatpush.bf16.msra.mxu2 %v512_v13 }
  0x1d   :  { %288 = vmatpush.bf16.msra.mxu0 %v495_v14 }
  0x1e   :  { %302 = vmatpush.bf16.msra.mxu1 %v503_v15 }
  0x1f   :  { %316 = vmatpush.bf16.msra.mxu2 %v511_v16 }
  0x21   :  { %289 = vmatpush.bf16.msra.mxu0 %v494_v18 }
  0x22   :  { %303 = vmatpush.bf16.msra.mxu1 %v502_v19 }
  0x23   :  { %317 = vmatpush.bf16.msra.mxu2 %v510_v20 }
  0x25   :  { %290 = vmatpush.bf16.msra.mxu0 %v493_v21 }
  0x26   :  { %304 = vmatpush.bf16.msra.mxu1 %v501_v22 }
  0x27   :  { %318 = vmatpush.bf16.msra.mxu2 %v509_v23 }
  0x29   :  { %291 = vmatpush.bf16.msra.mxu0 %v492_v24 }
  0x2a   :  { %305 = vmatpush.bf16.msra.mxu1 %v500_v25 }
  0x2b   :  { %319 = vmatpush.bf16.msra.mxu2 %v508_v30 }
  0x2c   :  { %292 = vmatmul.bf16.vlgmr.msra.gmra.mxu0 %v384_v33 }
  0x2d   :  { %306 = vmatmul.bf16.vlgmr.msra.gmra.mxu1 %v388_v34 }
  0x2e   :  { %320 = vmatmul.bf16.vlgmr.msra.gmra.mxu2 %v392_v35 }
  0x83   :  { %v56_v38 = vpop.permute.xlu0 %55 }
  0x8b   :  { %v61_v48 = vpop.permute.xlu0 %60 }
  0xa9   :  { %v293_v36 = vpop.f32.mrf.mxu0 }
  0xaa   :  { %v307_v37 = vpop.f32.mrf.mxu1 }
  0xab   :  { %v308_v40 = vadd.f32 %v307_v37, %v293_v36 }
  0xb1   :  { %v321_v39 = vpop.f32.mrf.mxu2  ;;  %v295_v41 = vpop.f32.mrf.mxu0 }
  0xb2   :  { %v309_v42 = vpop.f32.mrf.mxu1  ;;  %v322_v43 = vadd.f32 %v321_v39, %v308_v40 }
  0xb3   :  { %v310_v44 = vadd.f32 %v309_v42, %v295_v41 }
  0xb4   :  { %v326_v46 = vadd.f32 %v322_v43, %v56_v38 }
  0xb6   :  { %v335_v50 = vmul.f32 %v326_v46, %v326_v46 }
  0xb9   :  { %v323_v45 = vpop.f32.mrf.mxu2 }
  0xba   :  { %v324_v47 = vadd.f32 %v323_v45, %v310_v44 }
  0xbc   :  { %v327_v49 = vadd.f32 %v324_v47, %v61_v48 }
  0xbe   :  { %v337_v51 = vmul.f32 %v327_v49, %v327_v49 }
  0xc0   :  { %v338_v52 = vadd.f32 %v337_v51, %v335_v50 }
  0xc2   :  { %v343_v53 = vadd.f32 1e-12, %v338_v52  ;;  %v339_v54 = vadd.f32 1.0, %v338_v52 }
  0xc4   :  { %527 = vrsqrt.f32 %v343_v53  ;;  %v340_v55 = vadd.f32 1e-12, %v339_v54  ;;  %vm350_vm1 = vweird.f32 %v343_v53 }
  0xc6   :  { %529 = vrcp.f32 %v340_v55 }
  0xca   :  { %v528_v56 = vpop.eup %527 }
  0xcb   :  { %v345_v57 = vmul.f32 %v528_v56, %v343_v53  ;;  %vm351_vm0 = vweird.f32 %v528_v56 }
  0xcc   :  { %v530_v60 = vpop.eup %529  ;;  %vm352_vm2 = vmor %vm350_vm1, %vm351_vm0 }
  0xcd   :  { %v346_v58 = vmul.f32 %v528_v56, %v345_v57  ;;  %v342_v63 = vmul.f32 %v530_v60, %v338_v52 }
  0xcf   :  { %v347_v59 = vmul.f32 0.5, %v346_v58 }
  0xd1   :  { %v348_v61 = vsub.f32 1.5, %v347_v59 }
  0xd3   :  { %v349_v62 = vmul.f32 %v528_v56, %v348_v61 }
  0xd5   :  { %v353_v0 = vsel %vm352_vm2, %v528_v56, %v349_v62 }
  0xd6   :  { %v354_v1 = vmul.f32 %v353_v0, %v342_v63 }
  0xd8   :  { %v355_v2 = vmul.f32 %v354_v1, %v326_v46  ;;  %v357_v3 = vmul.f32 %v354_v1, %v327_v49 }
  0xda   :  { %356 = vst [vmem:[#allocation8] sm:$0xff] %v355_v2 }
  0xdb   :  { %358 = vst [vmem:[#allocation8 + $0x8] sm:$0xff] %v357_v3 }
  0xdc   :  { %371 = dma.vmem_to_hbm [thread:$0]  %s364_s28, 256, %s366_s4, [#allocation5], %s617_s5, %s617_s5, %s618_s6  }
  0xdd   :  { %607 = dma.done.wait [#allocation5], 256  }
  0xde   :  { %608 = vsyncadd [#allocation5], 4294967040 }
  0xdf   :  { %376 = vsyncpa [#allocation4], 1 }
  0xe0   :  { %377 = vsyncpa [#allocation7], 1 }
  0xe1   :  { %378 = vsyncpa [#allocation5], 1 }

</bundles_post_ra>
